<compile_context>
chip_gen: v7x
topology: tpu7x:2x2x1
jax: 0.10.0
libtpu: 0.0.40
codegen_flags: <defaults>
</compile_context>

<pallas_src>
from functools import partial

import jax
import jax.numpy as jnp
from jax.experimental import pallas as pl
from jax.experimental.pallas import tpu as pltpu


def _round_up(x, m):
    return -(-x // m) * m


def _vmem_capacity_bytes():
    """Per-core VMEM capacity; conservative 64 MiB fallback (v7x size) if unavailable."""
    try:
        return int(pltpu.get_tpu_info().vmem_capacity_bytes)
    except Exception:
        return 64 * 1024 * 1024


def _pick_batch_tile(B, per_sample_vmem_bytes, x_budget_bytes):
    """Largest batch tile whose working set fits the budget, kept either == B or a
    multiple of 8 (sublane alignment of the (TB, Zp)/(TB, 3Zp) blocks), and capped so
    the grid has >= 2 steps whenever B allows it (megacore on v7x + pipeline overlap)."""
    tb = max(1, x_budget_bytes // max(1, per_sample_vmem_bytes))
    if B > 8:
        tb = min(tb, max(8, _round_up(-(-B // 2), 8)))   # at most ~half the batch
    if tb >= B:
        return B
    return max(8, (tb // 8) * 8)


def _encoder_head_kernel(x_ref, w_ref, b_ref, noise_ref, out_ref, *, zp):
    # x_ref:     (TB, C, HW)   backbone features, native NCHW layout (f32 or bf16)
    # w_ref:     (C, 2*Zp)     [w_mu^T | w_sigma^T] / HW   (mean folded in, Z padded)
    # b_ref:     (1, 2*Zp)     [b_mu | b_sigma]            (Z padded)
    # noise_ref: (TB, Zp)      standard-normal draws (zero-padded)
    # out_ref:   (TB, 3*Zp)    packed [z_vector | z_mu | z_sigma]
    x = x_ref[...].astype(jnp.float32)                 # f32 accumulation (v5e: no bf16 VALU)

    # AdaptiveAvgPool2d(1) + flatten: sum over HW (lane axis, XLU); 1/HW lives in w.
    pooled = jnp.sum(x, axis=-1)                       # (TB, C)

    # Fused mu/sigma Linear: one MXU matmul over the concatenated weight.
    zz = jnp.dot(pooled, w_ref[...], preferred_element_type=jnp.float32) + b_ref[...]
    z_mu = zz[:, :zp]                                  # lane-aligned slice (Zp % 128 == 0)
    z_sigma = zz[:, zp:]

    # Reparameterisation exactly as in the PyTorch forward (non-standard on purpose):
    #   eps = randn * z_sigma + z_mu ; z_vector = z_mu + z_sigma * eps
    eps = noise_ref[...] * z_sigma + z_mu
    z_vector = z_mu + z_sigma * eps

    out_ref[...] = jnp.concatenate([z_vector, z_mu, z_sigma], axis=-1)


def prepare_encoder_params(w_mu, b_mu, w_sigma, b_sigma, hw, *, param_dtype=jnp.float32):
    """Fold the PyTorch-convention weights into the kernel layout ONCE per model:
       w_cat = [w_mu^T | w_sigma^T] / HW  (C, 2*Zp),  b_cat = [b_mu | b_sigma] (1, 2*Zp),
       with Z zero-padded up to Zp = round_up(Z, 128) so every in-kernel slice/store is
       lane-aligned.  param_dtype=jnp.bfloat16 halves the resident weight at real scale."""
    Z, C = w_mu.shape
    Zp = _round_up(Z, 128)
    w_cat = jnp.zeros((C, 2 * Zp), jnp.float32)
    w_cat = w_cat.at[:, :Z].set(jnp.asarray(w_mu, jnp.float32).T / float(hw))
    w_cat = w_cat.at[:, Zp:Zp + Z].set(jnp.asarray(w_sigma, jnp.float32).T / float(hw))
    b_cat = jnp.zeros((1, 2 * Zp), jnp.float32)
    b_cat = b_cat.at[:, :Z].set(jnp.asarray(b_mu, jnp.float32))
    b_cat = b_cat.at[:, Zp:Zp + Z].set(jnp.asarray(b_sigma, jnp.float32))
    return (w_cat.astype(param_dtype), b_cat, Z, Zp, int(hw))


def encoder_head(feat_nchw, params, noise):
    """Fused AdaptiveAvgPool2d(1) + Linear(mu) + Linear(sigma) + reparameterisation.

    feat_nchw: (B, C, H, W) backbone features (f32 or bf16), native layout — no transpose.
    params:    output of prepare_encoder_params (built once per model, not per call).
    noise:     (B, z_size) standard-normal draws (torch.randn equivalent).
    Returns (z_vector, z_mu, z_sigma), each (B, z_size) float32.
    """
    w_cat, b_cat, Z, Zp, hw_expected = params
    B, C, H, W = feat_nchw.shape
    HW = H * W
    assert HW == hw_expected, "params were prepared for a different spatial size"
    assert w_cat.shape[0] == C, "params were prepared for a different channel count"

    # Zero-copy reshape of the contiguous NCHW feature map; pooling happens in-kernel.
    x = feat_nchw.reshape(B, C, HW)

    # Pad the (tiny) noise tensor up to the lane-aligned Zp.
    noise = noise.astype(jnp.float32)
    if Zp != Z:
        noise = jnp.pad(noise, ((0, 0), (0, Zp - Z)))

    # ---- generation-aware tiling / VMEM budgeting -------------------------------
    vmem_cap = _vmem_capacity_bytes()                       # 128 MiB v5e/v6e, 64 MiB/TC v7x
    vmem_limit = min(int(vmem_cap * 3 // 4), 112 * 1024 * 1024)
    hw_pad = _round_up(HW, 128)                             # lane padding of the x tile
    c_pad = _round_up(C, 8)
    w_vmem = c_pad * w_cat.shape[1] * w_cat.dtype.itemsize
    b_vmem = 8 * b_cat.shape[1] * 4
    resident = 2 * (w_vmem + b_vmem)                        # assume default double-buffering
    misc = 2 * 1024 * 1024
    x_budget = max(1 << 20, vmem_limit - resident - misc)
    # 2x: double-buffered input tile; +4: f32 pooling temporary of the same tile.
    per_sample = c_pad * hw_pad * (2 * x.dtype.itemsize + 4)
    per_sample += 2 * 4 * (6 * Zp)                          # noise/out/zz blocks
    TB = _pick_batch_tile(B, per_sample, x_budget)
    grid = (pl.cdiv(B, TB),)

    cost = pl.CostEstimate(
        flops=int(B * C * HW + 2 * B * C * (2 * Zp) + 6 * B * Zp),
        transcendentals=0,
        bytes_accessed=int(x.size * x.dtype.itemsize
                           + w_cat.size * w_cat.dtype.itemsize
                           + b_cat.size * 4 + noise.size * 4 + B * 3 * Zp * 4),
    )

    def build(single_buffer_resident):
        res_kw = {"pipeline_mode": pl.Buffered(1)} if single_buffer_resident else {}
        return pl.pallas_call(
            partial(_encoder_head_kernel, zp=Zp),
            out_shape=jax.ShapeDtypeStruct((B, 3 * Zp), jnp.float32),
            grid=grid,
            in_specs=[
                pl.BlockSpec((TB, C, HW), lambda i: (i, 0, 0)),            # x tile (pipelined)
                pl.BlockSpec((C, 2 * Zp), lambda i: (0, 0), **res_kw),     # fused weight (resident)
                pl.BlockSpec((1, 2 * Zp), lambda i: (0, 0), **res_kw),     # fused bias   (resident)
                pl.BlockSpec((TB, Zp), lambda i: (i, 0)),                  # noise tile
            ],
            out_specs=pl.BlockSpec((TB, 3 * Zp), lambda i: (i, 0)),        # packed, lane-dense
            compiler_params=pltpu.CompilerParams(
                dimension_semantics=("parallel",),                         # megacore on v7x
                vmem_limit_bytes=vmem_limit),
            cost_estimate=cost,
        )

    try:
        # Single-buffer the constant-index weight/bias blocks (frees VMEM at real scale).
        packed = build(True)(x, w_cat, b_cat, noise)
    except Exception:
        # pipeline_mode / pl.Buffered(1) unsupported on this jax build — plain specs.
        packed = build(False)(x, w_cat, b_cat, noise)

    z_vector = packed[:, :Z]
    z_mu = packed[:, Zp:Zp + Z]
    z_sigma = packed[:, 2 * Zp:2 * Zp + Z]
    return z_vector, z_mu, z_sigma


if __name__ == "__main__":
    # Small, densenet-like synthetic shapes:
    #   feature map (B=2, C_feat=32, H=8, W=8)  (densenet_out stand-in = 32), z_size = 16
    B, C, H, W, Z = 2, 32, 8, 8, 16

    key = jax.random.PRNGKey(0)
    k_feat, k_wmu, k_bmu, k_wsg, k_bsg, k_noise = jax.random.split(key, 6)

    # Backbone features in bf16 (halves the dominant HBM read); reparam math stays f32.
    feat = jax.random.normal(k_feat, (B, C, H, W), dtype=jnp.float32).astype(jnp.bfloat16)
    bound = 1.0 / jnp.sqrt(C)
    w_mu = jax.random.uniform(k_wmu, (Z, C), minval=-bound, maxval=bound)
    b_mu = jax.random.uniform(k_bmu, (Z,), minval=-bound, maxval=bound)
    w_sigma = jax.random.uniform(k_wsg, (Z, C), minval=-bound, maxval=bound)
    b_sigma = jax.random.uniform(k_bsg, (Z,), minval=-bound, maxval=bound)
    noise = jax.random.normal(k_noise, (B, Z), dtype=jnp.float32)

    # Weight prep happens once per model (hoisted out of the per-step call).
    params = prepare_encoder_params(w_mu, b_mu, w_sigma, b_sigma, H * W)

    z_vec, z_mu, z_sigma = encoder_head(feat, params, noise)
    jax.block_until_ready((z_vec, z_mu, z_sigma))

    # Pure-JAX reference of the head semantics (faithful to the PyTorch forward),
    # using the same bf16-quantized feature values the kernel sees.
    feat32 = feat.astype(jnp.float32)
    pooled_ref = jnp.mean(feat32.reshape(B, C, H * W), axis=-1)
    mu_ref = pooled_ref @ w_mu.T + b_mu
    sg_ref = pooled_ref @ w_sigma.T + b_sigma
    eps_ref = noise * sg_ref + mu_ref
    zv_ref = mu_ref + sg_ref * eps_ref
    assert jnp.allclose(z_mu, mu_ref, atol=5e-4, rtol=5e-4)
    assert jnp.allclose(z_sigma, sg_ref, atol=5e-4, rtol=5e-4)
    assert jnp.allclose(z_vec, zv_ref, atol=5e-4, rtol=5e-4)

    print("KERNEL_OK")
</pallas_src>

<mosaic_0001>
module attributes {stable_mosaic.version = 11 : i64} {
  func.func @_encoder_head_kernel(%arg0: i32, %arg1: memref<2x32x64xbf16, #tpu.memory_space<vmem>>, %arg2: memref<32x256xf32, #tpu.memory_space<vmem>>, %arg3: memref<1x256xf32, #tpu.memory_space<vmem>>, %arg4: memref<2x128xf32, #tpu.memory_space<vmem>>, %arg5: memref<2x384xf32, #tpu.memory_space<vmem>>) attributes {dimension_semantics = [#tpu.dimension_semantics<parallel>], iteration_bounds = array<i64: 1>, scalar_prefetch = 0 : i64, scratch_operands = 0 : i64, tpu.core_type = #tpu.core_type<tc>, window_params = [{transform_indices = @transform_0, window_bounds = array<i64: 2, 32, 64>}, {pipeline_mode = #tpu.pipeline_mode<synchronous>, transform_indices = @transform_1, window_bounds = array<i64: 32, 256>}, {pipeline_mode = #tpu.pipeline_mode<synchronous>, transform_indices = @transform_2, window_bounds = array<i64: 1, 256>}, {transform_indices = @transform_3, window_bounds = array<i64: 2, 128>}, {transform_indices = @transform_4, window_bounds = array<i64: 2, 384>}]} {
    %c0 = arith.constant 0 : index
    %c0_0 = arith.constant 0 : index
    %c0_1 = arith.constant 0 : index
    %0 = vector.load %arg1[%c0, %c0_0, %c0_1] : memref<2x32x64xbf16, #tpu.memory_space<vmem>>, vector<2x32x64xbf16>
    %1 = arith.extf %0 : vector<2x32x64xbf16> to vector<2x32x64xf32>
    %cst = arith.constant dense<0.000000e+00> : vector<2x32xf32>
    %2 = vector.multi_reduction <add>, %1, %cst [2] : vector<2x32x64xf32> to vector<2x32xf32>
    %c0_2 = arith.constant 0 : index
    %c0_3 = arith.constant 0 : index
    %3 = vector.load %arg2[%c0_2, %c0_3] : memref<32x256xf32, #tpu.memory_space<vmem>>, vector<32x256xf32>
    %cst_4 = arith.constant dense<0.000000e+00> : vector<2x256xf32>
    %4 = tpu.matmul %2, %3, %cst_4 {dimension_numbers = #tpu.dot_dimension_numbers<[1], [0], [0], [1], [0, 0, 1, 1], [], []>} : vector<2x32xf32>, vector<32x256xf32>, vector<2x256xf32> -> vector<2x256xf32>
    %c0_5 = arith.constant 0 : index
    %c0_6 = arith.constant 0 : index
    %5 = vector.load %arg3[%c0_5, %c0_6] : memref<1x256xf32, #tpu.memory_space<vmem>>, vector<1x256xf32>
    %6 = vector.broadcast %5 : vector<1x256xf32> to vector<2x256xf32>
    %7 = arith.addf %4, %6 : vector<2x256xf32>
    %8 = vector.extract_strided_slice %7 {offsets = [0, 0], sizes = [2, 128], strides = [1, 1]} : vector<2x256xf32> to vector<2x128xf32>
    %9 = vector.extract_strided_slice %7 {offsets = [0, 128], sizes = [2, 128], strides = [1, 1]} : vector<2x256xf32> to vector<2x128xf32>
    %c0_7 = arith.constant 0 : index
    %c0_8 = arith.constant 0 : index
    %10 = vector.load %arg4[%c0_7, %c0_8] : memref<2x128xf32, #tpu.memory_space<vmem>>, vector<2x128xf32>
    %11 = arith.mulf %10, %9 : vector<2x128xf32>
    %12 = arith.addf %11, %8 : vector<2x128xf32>
    %13 = arith.mulf %9, %12 : vector<2x128xf32>
    %14 = arith.addf %8, %13 : vector<2x128xf32>
    %15 = tpu.concatenate %14, %8, %9 in 1 : vector<2x128xf32>, vector<2x128xf32>, vector<2x128xf32> -> vector<2x384xf32>
    %c0_9 = arith.constant 0 : index
    %c0_10 = arith.constant 0 : index
    %16 = vector.load %arg5[%c0_9, %c0_10] : memref<2x384xf32, #tpu.memory_space<vmem>>, vector<2x384xf32>
    tpu.vector_store %arg5[%c0_9, %c0_10], %15 {strides = array<i32>} : memref<2x384xf32, #tpu.memory_space<vmem>>, vector<2x384xf32>,
    return
  }
  func.func @transform_0(%arg0: i32) -> (i32, i32, i32) {
    %c0_i32 = arith.constant 0 : i32
    %c0_i32_0 = arith.constant 0 : i32
    %c0_i32_1 = arith.constant 0 : i32
    return %arg0, %c0_i32, %c0_i32_0 : i32, i32, i32
  }
  func.func @transform_1(%arg0: i32) -> (i32, i32) {
    %c0_i32 = arith.constant 0 : i32
    %c0_i32_0 = arith.constant 0 : i32
    %c0_i32_1 = arith.constant 0 : i32
    return %c0_i32, %c0_i32_0 : i32, i32
  }
  func.func @transform_2(%arg0: i32) -> (i32, i32) {
    %c0_i32 = arith.constant 0 : i32
    %c0_i32_0 = arith.constant 0 : i32
    %c0_i32_1 = arith.constant 0 : i32
    return %c0_i32, %c0_i32_0 : i32, i32
  }
  func.func @transform_3(%arg0: i32) -> (i32, i32) {
    %c0_i32 = arith.constant 0 : i32
    %c0_i32_0 = arith.constant 0 : i32
    return %arg0, %c0_i32 : i32, i32
  }
  func.func @transform_4(%arg0: i32) -> (i32, i32) {
    %c0_i32 = arith.constant 0 : i32
    %c0_i32_0 = arith.constant 0 : i32
    return %arg0, %c0_i32 : i32, i32
  }
}

module attributes {stable_mosaic.version = 11 : i64} {
  func.func @_encoder_head_kernel(%arg0: i32, %arg1: memref<2x32x64xbf16, #tpu.memory_space<vmem>>, %arg2: memref<32x256xf32, #tpu.memory_space<vmem>>, %arg3: memref<1x256xf32, #tpu.memory_space<vmem>>, %arg4: memref<2x128xf32, #tpu.memory_space<vmem>>, %arg5: memref<2x384xf32, #tpu.memory_space<vmem>>) attributes {dimension_semantics = [#tpu.dimension_semantics<parallel>], iteration_bounds = array<i64: 1>, scalar_prefetch = 0 : i64, scratch_operands = 0 : i64, tpu.core_type = #tpu.core_type<tc>, window_params = [{transform_indices = @transform_0, window_bounds = array<i64: 2, 32, 64>}, {pipeline_mode = #tpu.pipeline_mode<synchronous>, transform_indices = @transform_1, window_bounds = array<i64: 32, 256>}, {pipeline_mode = #tpu.pipeline_mode<synchronous>, transform_indices = @transform_2, window_bounds = array<i64: 1, 256>}, {transform_indices = @transform_3, window_bounds = array<i64: 2, 128>}, {transform_indices = @transform_4, window_bounds = array<i64: 2, 384>}]} {
    %c0 = arith.constant 0 : index
    %c0_0 = arith.constant 0 : index
    %c0_1 = arith.constant 0 : index
    %0 = vector.load %arg1[%c0, %c0_0, %c0_1] : memref<2x32x64xbf16, #tpu.memory_space<vmem>>, vector<2x32x64xbf16>
    %1 = arith.extf %0 : vector<2x32x64xbf16> to vector<2x32x64xf32>
    %cst = arith.constant dense<0.000000e+00> : vector<2x32xf32>
    %2 = vector.multi_reduction <add>, %1, %cst [2] : vector<2x32x64xf32> to vector<2x32xf32>
    %c0_2 = arith.constant 0 : index
    %c0_3 = arith.constant 0 : index
    %3 = vector.load %arg2[%c0_2, %c0_3] : memref<32x256xf32, #tpu.memory_space<vmem>>, vector<32x256xf32>
    %cst_4 = arith.constant dense<0.000000e+00> : vector<2x256xf32>
    %4 = tpu.matmul %2, %3, %cst_4 {dimension_numbers = #tpu.dot_dimension_numbers<[1], [0], [0], [1], [0, 0, 1, 1], [], []>} : vector<2x32xf32>, vector<32x256xf32>, vector<2x256xf32> -> vector<2x256xf32>
    %c0_5 = arith.constant 0 : index
    %c0_6 = arith.constant 0 : index
    %5 = vector.load %arg3[%c0_5, %c0_6] : memref<1x256xf32, #tpu.memory_space<vmem>>, vector<1x256xf32>
    %6 = vector.broadcast %5 : vector<1x256xf32> to vector<2x256xf32>
    %7 = arith.addf %4, %6 : vector<2x256xf32>
    %8 = vector.extract_strided_slice %7 {offsets = [0, 0], sizes = [2, 128], strides = [1, 1]} : vector<2x256xf32> to vector<2x128xf32>
    %9 = vector.extract_strided_slice %7 {offsets = [0, 128], sizes = [2, 128], strides = [1, 1]} : vector<2x256xf32> to vector<2x128xf32>
    %c0_7 = arith.constant 0 : index
    %c0_8 = arith.constant 0 : index
    %10 = vector.load %arg4[%c0_7, %c0_8] : memref<2x128xf32, #tpu.memory_space<vmem>>, vector<2x128xf32>
    %11 = arith.mulf %10, %9 : vector<2x128xf32>
    %12 = arith.addf %11, %8 : vector<2x128xf32>
    %13 = arith.mulf %9, %12 : vector<2x128xf32>
    %14 = arith.addf %8, %13 : vector<2x128xf32>
    %15 = tpu.concatenate %14, %8, %9 in 1 : vector<2x128xf32>, vector<2x128xf32>, vector<2x128xf32> -> vector<2x384xf32>
    %c0_9 = arith.constant 0 : index
    %c0_10 = arith.constant 0 : index
    %16 = vector.load %arg5[%c0_9, %c0_10] : memref<2x384xf32, #tpu.memory_space<vmem>>, vector<2x384xf32>
    tpu.vector_store %arg5[%c0_9, %c0_10], %15 {strides = array<i32>} : memref<2x384xf32, #tpu.memory_space<vmem>>, vector<2x384xf32>,
    return
  }
  func.func @transform_0(%arg0: i32) -> (i32, i32, i32) {
    %c0_i32 = arith.constant 0 : i32
    %c0_i32_0 = arith.constant 0 : i32
    %c0_i32_1 = arith.constant 0 : i32
    return %arg0, %c0_i32, %c0_i32_0 : i32, i32, i32
  }
  func.func @transform_1(%arg0: i32) -> (i32, i32) {
    %c0_i32 = arith.constant 0 : i32
    %c0_i32_0 = arith.constant 0 : i32
    %c0_i32_1 = arith.constant 0 : i32
    return %c0_i32, %c0_i32_0 : i32, i32
  }
  func.func @transform_2(%arg0: i32) -> (i32, i32) {
    %c0_i32 = arith.constant 0 : i32
    %c0_i32_0 = arith.constant 0 : i32
    %c0_i32_1 = arith.constant 0 : i32
    return %c0_i32, %c0_i32_0 : i32, i32
  }
  func.func @transform_3(%arg0: i32) -> (i32, i32) {
    %c0_i32 = arith.constant 0 : i32
    %c0_i32_0 = arith.constant 0 : i32
    return %arg0, %c0_i32 : i32, i32
  }
  func.func @transform_4(%arg0: i32) -> (i32, i32) {
    %c0_i32 = arith.constant 0 : i32
    %c0_i32_0 = arith.constant 0 : i32
    return %arg0, %c0_i32 : i32, i32
  }
}

</mosaic_0001>

<bundles_post_ra>
// kernel: tpu_custom_call.1
= control target key start
LH: loop header
LB: loop body
LE: loop exit
PB: predicated region body
PF: predicated region fallthrough
CT: control target
= control target key end

     0   :  { %9 = vsyncpa [#allocation3], 0  ;;  %s472_s0 = inlined_call_operand.hbm [shape: bf16[2,32,64], index: 0, kind: input, shape index: {}]   ;;  %s473_s1 = inlined_call_operand.hbm [shape: f32[32,256], index: 1, kind: input, shape index: {}]   ;;  %s474_s2 = inlined_call_operand.vmem [shape: f32[1,256], index: 2, kind: input, shape index: {}]   ;;  %s475_s3 = inlined_call_operand.vmem [shape: f32[2,128], index: 3, kind: input, shape index: {}]   ;;  %s476_s4 = inlined_call_operand.hbm [shape: f32[2,384], index: 4, kind: output, shape index: {}]  }
   0x1   :  { %10 = vsyncpa [#allocation6], 0 }
   0x2   :  { %11 = vsyncpa [#allocation4], 0  ;;  %s388_s15 = smov [#allocation2]   ;;  %s316_s19 = scalar_lea.hbm %s472_s0, 512 }
   0x3   :  { %s17_s16 = sshll.u32 %s388_s15, 4  ;;  %p317_p0 = scmp.ne.s32.totalorder %s472_s0, %s316_s19  ;;  %s18_s16 = int_to_ptr.vmem [resolvable:$true] %s17_s16 }
   0x4   :  { %p320_p1 = scmp.lt.u32.totalorder %s316_s19, %s472_s0 }
   0x6   :  { %p322_p2 = pnand %p320_p1, %p317_p0 }
   0x8   :  { %325 = shalt.err (!%p322_p2)
}
   0x9   :  { %s326_s24 = scalar_lea.vmem %s18_s16, 512  ;;  %p331_p4 = scmp.lt.s32.totalorder %s18_s16, %s18_s16 }
   0xa   :  { %p327_p3 = scmp.ne.s32.totalorder %s18_s16, %s326_s24  ;;  %p332_p5 = scmp.lt.s32.totalorder %s326_s24, %s326_s24 }
   0xc   :  { %p333_p6 = por %p332_p5, %p331_p4 }
   0xe   :  { %p334_p7 = pnand %p333_p6, %p327_p3 }
  0x10   :  { %337 = shalt.err (!%p334_p7)
}
  0x11   :  { %s389_s25 = smov 64   ;;  %s390_s26 = smov 4  }
  0x12   :  { %23 = dma.hbm_to_vmem [thread:$0]  %s472_s0, 512, %s18_s16, [#allocation3], %s389_s25, %s389_s25, %s390_s26  }
  0x13   :  { %s391_s29 = smov [#allocation5]   ;;  %s338_s7 = scalar_lea.hbm %s473_s1, 1024 }
  0x14   :  { %s29_s30 = sshll.u32 %s391_s29, 4  ;;  %p339_p8 = scmp.ne.s32.totalorder %s473_s1, %s338_s7  ;;  %s30_s30 = int_to_ptr.vmem [resolvable:$true] %s29_s30 }
  0x15   :  { %p342_p9 = scmp.lt.u32.totalorder %s338_s7, %s473_s1 }
  0x17   :  { %p344_p10 = pnand %p342_p9, %p339_p8 }
  0x19   :  { %347 = shalt.err (!%p344_p10)
}
  0x1a   :  { %s348_s12 = scalar_lea.vmem %s30_s30, 1024  ;;  %p353_p12 = scmp.lt.s32.totalorder %s30_s30, %s30_s30 }
  0x1b   :  { %p349_p11 = scmp.ne.s32.totalorder %s30_s30, %s348_s12  ;;  %p354_p13 = scmp.lt.s32.totalorder %s348_s12, %s348_s12 }
  0x1d   :  { %p355_p0 = por %p354_p13, %p353_p12 }
  0x1f   :  { %p356_p1 = pnand %p355_p0, %p349_p11 }
  0x21   :  { %359 = shalt.err (!%p356_p1)
}
  0x22   :  { %s392_s0 = smov 256   ;;  %s393_s13 = smov 16  }
  0x23   :  { %35 = dma.hbm_to_vmem [thread:$0]  %s473_s1, 1024, %s30_s30, [#allocation6], %s392_s0, %s392_s0, %s393_s13  }
  0x24   :  { %382 = dma.done.wait [#allocation3], 512  }
  0x25   :  { %383 = vsyncadd [#allocation3], 4294966784 }
  0x26   :  { %384 = dma.done.wait [#allocation6], 1024  }
  0x27   :  { %385 = vsyncadd [#allocation6], 4294966272  ;;  %v297_v0 = vld [vmem:[#allocation2 + $0x10] sm:$0xff]   ;;  %vm62_vm0 = vcmask 523264   ;;  %v281_v1 = vld [vmem:[#allocation2] sm:$0xff]   ;;  %v394_v32 = vmov 0.0   ;;  %v97_v33 = vlaneseq }
  0x28   :  { %v290_v2 = vunpack.c.l.bf16 %v297_v0  ;;  %v282_v3 = vunpack.c.l.bf16 %v281_v1  ;;  %v291_v4 = vunpack.c.h.bf16 %v297_v0  ;;  %v283_v5 = vunpack.c.h.bf16 %v281_v1  ;;  %v298_v6 = vld [vmem:[#allocation2 + $0x18] sm:$0xff]   ;;  %v296_v7 = vld [vmem:[#allocation2 + $0x8] sm:$0xff]   ;;  %v87_v23 = vld [vmem:[#allocation5] sm:$0xff]  ;;  %230 = vmatprep.mubr.f32.mxu0 %v394_v32 }
  0x29   :  { %v294_v12 = vunpack.c.l.bf16 %v298_v6  ;;  %v286_v13 = vunpack.c.l.bf16 %v296_v7  ;;  %v295_v16 = vunpack.c.h.bf16 %v298_v6  ;;  %v287_v17 = vunpack.c.h.bf16 %v296_v7  ;;  %v88_v20 = vld [vmem:[#allocation5 + $0x8] sm:$0xff]  ;;  %v90_v21 = vld [vmem:[#allocation5 + $0x18] sm:$0xff]  ;;  %v89_v24 = vld [vmem:[#allocation5 + $0x10] sm:$0xff] }
  0x2a   :  { %v75_v8 = vsel %vm62_vm0, %v290_v2, 0.0  ;;  %v63_v9 = vsel %vm62_vm0, %v282_v3, 0.0  ;;  %v78_v10 = vsel %vm62_vm0, %v291_v4, 0.0  ;;  %v66_v11 = vsel %vm62_vm0, %v283_v5, 0.0  ;;  %v92_v26 = vld [vmem:[#allocation5 + $0x28] sm:$0xff]  ;;  %v94_v27 = vld [vmem:[#allocation5 + $0x38] sm:$0xff] }
  0x2b   :  { %76 = vadd.xlane.f32.xlu1 %v75_v8  ;;  %64 = vadd.xlane.f32.xlu0 %v63_v9  ;;  %v81_v14 = vsel %vm62_vm0, %v294_v12, 0.0  ;;  %v69_v15 = vsel %vm62_vm0, %v286_v13, 0.0  ;;  %v84_v18 = vsel %vm62_vm0, %v295_v16, 0.0  ;;  %v72_v19 = vsel %vm62_vm0, %v287_v17, 0.0  ;;  %v91_v29 = vld [vmem:[#allocation5 + $0x20] sm:$0xff]  ;;  %v93_v30 = vld [vmem:[#allocation5 + $0x30] sm:$0xff] }
  0x2c   :  { %v299_v22 = vpack.c.bf16 %v90_v21, %v88_v20  ;;  %v301_v25 = vpack.c.bf16 %v89_v24, %v87_v23  ;;  %v303_v28 = vpack.c.bf16 %v94_v27, %v92_v26  ;;  %v305_v31 = vpack.c.bf16 %v93_v30, %v91_v29  ;;  %v95_v3 = vld [vmem:[%s474_s2] sm:$0x3]  ;;  %s396_s2 = smov [#allocation7]  }
  0x2d   :  { %v116_v34 = vand.u32 127, %v97_v33  ;;  %v98_v39 = vshrl.u32 %v97_v33, 7  ;;  %vm126_vm1 = vcmask 130112   ;;  %vm133_vm2 = vcmask 195712   ;;  %v237_v9 = vld [vmem:[%s475_s3] sm:$0x3] }
  0x2e   :  { %300 = vmatprep.subr.bf16.mxu0 %v299_v22  ;;  %vm140_vm3 = vcmask 261312   ;;  %vm161_vm4 = vcmask 1041409   ;;  %vm163_vm5 = vcmask 261120   ;;  %s269_s19 = sshll.u32 %s396_s2, 4  ;;  %s270_s19 = int_to_ptr.vmem [resolvable:$true] %s269_s19 }
  0x2f   :  { %79 = vadd.xlane.f32.xlu1 %v78_v10  ;;  %67 = vadd.xlane.f32.xlu0 %v66_v11  ;;  %v121_v37 = vadd.s32 4294967288, %v116_v34  ;;  %v128_v38 = vadd.s32 4294967280, %v116_v34  ;;  %v135_v43 = vadd.s32 4294967272, %v116_v34  ;;  %v119_v45 = vsub.s32 %v116_v34, %v98_v39  ;;  %s360_s20 = scalar_lea.vmem %s270_s19, 96  ;;  %p365_p3 = scmp.lt.s32.totalorder %s270_s19, %s270_s19 }
  0x30   :  { %302 = vmatpush1.bf16.msra.mxu0 %v301_v25  ;;  %v103_v2 = vsub.s32 1, %v98_v39  ;;  %v99_v4 = vsub.s32 0, %v98_v39  ;;  %v395_v11 = vmov 1983009808   ;;  %p361_p2 = scmp.ne.s32.totalorder %s270_s19, %s360_s20  ;;  %p366_p4 = scmp.lt.s32.totalorder %s360_s20, %s360_s20 }
  0x31   :  { %304 = vmatprep.subr.bf16.mxu0 %v303_v28  ;;  %v124_v42 = vsub.s32 %v121_v37, %v98_v39  ;;  %v131_v44 = vsub.s32 %v128_v38, %v98_v39  ;;  %v138_v50 = vsub.s32 %v135_v43, %v98_v39  ;;  %v247_v12 = vunpack.c.l.s4 %v395_v11 }
  0x32   :  { %v104_v5 = vrot.slane %v95_v3, %v103_v2  ;;  %v100_v6 = vrot.slane %v95_v3, %v99_v4  ;;  %p367_p5 = por %p366_p4, %p365_p3 }
  0x33   :  { %82 = vadd.xlane.f32.xlu1 %v81_v14  ;;  %70 = vadd.xlane.f32.xlu0 %v69_v15  ;;  %v248_v16 = vunpack.c.0.s8 %v247_v12 }
  0x34   :  { %306 = vmatpush1.bf16.msra.mxu0 %v305_v31  ;;  %p368_p6 = pnand %p367_p5, %p361_p2 }
  0x37   :  { %85 = vadd.xlane.f32.xlu1 %v84_v18  ;;  %73 = vadd.xlane.f32.xlu0 %v72_v19  ;;  %v251_v19 = vsub.s32 %v248_v16, %v98_v39 }
  0xb8   :  { %v77_v35 = vpop.xlane.xlu1 %76  ;;  %v65_v36 = vpop.xlane.xlu0 %64 }
  0xb9   :  { %v145_v53 = vrot.slane %v77_v35, %v119_v45  ;;  %v120_v54 = vrot.slane %v65_v36, %v119_v45 }
  0xbc   :  { %v80_v40 = vpop.xlane.xlu1 %79  ;;  %v68_v41 = vpop.xlane.xlu0 %67 }
  0xbd   :  { %v149_v48 = vrot.slane %v80_v40, %v124_v42  ;;  %v125_v49 = vrot.slane %v68_v41, %v124_v42 }
  0xbf   :  { %v150_v57 = vsel %vm126_vm1, %v149_v48, %v145_v53  ;;  %v127_v58 = vsel %vm126_vm1, %v125_v49, %v120_v54 }
  0xc0   :  { %v83_v46 = vpop.xlane.xlu1 %82  ;;  %v71_v47 = vpop.xlane.xlu0 %70 }
  0xc1   :  { %v154_v51 = vrot.slane %v83_v46, %v131_v44  ;;  %v132_v52 = vrot.slane %v71_v47, %v131_v44 }
  0xc3   :  { %v155_v61 = vsel %vm133_vm2, %v154_v51, %v150_v57  ;;  %v134_v62 = vsel %vm133_vm2, %v132_v52, %v127_v58 }
  0xc4   :  { %v86_v55 = vpop.xlane.xlu1 %85  ;;  %v74_v56 = vpop.xlane.xlu0 %73 }
  0xc5   :  { %v159_v59 = vrot.slane %v86_v55, %v138_v50  ;;  %v139_v60 = vrot.slane %v74_v56, %v138_v50 }
  0xc7   :  { %v160_v63 = vsel %vm140_vm3, %v159_v59, %v155_v61  ;;  %v141_v0 = vsel %vm140_vm3, %v139_v60, %v134_v62 }
  0xc8   :  { %v162_v1 = vsel %vm161_vm4, %v160_v63, %v141_v0 }
  0xc9   :  { %279 = vmatmul.mubr.msk.f32.vlgmr.msra.gmra.mrb[0].mxu0 %vm163_vm5, %v162_v1 }
 0x19c   :  { %v232_v7 = vpop.f32.mrb[0].mxu0 }
 0x19d   :  { %v234_v8 = vpop.f32.mrb[1].mxu0  ;;  %v233_v13 = vadd.f32 %v232_v7, %v100_v6 }
 0x19e   :  { %v235_v10 = vadd.f32 %v234_v8, %v104_v5 }
 0x1a0   :  { %v238_v14 = vmul.f32 %v237_v9, %v235_v10  ;;  %v259_v21 = vrot.slane %v235_v10, %v251_v19 }
 0x1a2   :  { %v239_v15 = vadd.f32 %v238_v14, %v233_v13 }
 0x1a4   :  { %v240_v17 = vmul.f32 %v239_v15, %v235_v10 }
 0x1a6   :  { %v241_v18 = vadd.f32 %v240_v17, %v233_v13 }
 0x1a8   :  { %v245_v20 = vcombine.low %v241_v18, %v233_v13 }
 0x1aa   :  { %v252_v22 = vrot.slane %v245_v20, %v251_v19 }
 0x1ac   :  { %v260_v23 = vcombine.low %v252_v22, %v259_v21 }
 0x1ae   :  { %262 = vst [vmem:[#allocation7] sm:$0x3f] %v260_v23 }
 0x1af   :  { %371 = shalt.err (!%p368_p6)
}
 0x1b0   :  { %s372_s22 = scalar_lea.hbm %s476_s4, 96 }
 0x1b1   :  { %p373_p7 = scmp.ne.s32.totalorder %s476_s4, %s372_s22  ;;  %p376_p8 = scmp.lt.u32.totalorder %s372_s22, %s476_s4 }
 0x1b3   :  { %p378_p9 = pnand %p376_p8, %p373_p7 }
 0x1b5   :  { %381 = shalt.err (!%p378_p9)
}
 0x1b6   :  { %272 = dma.vmem_to_hbm [thread:$0]  %s270_s19, 96, %s476_s4, [#allocation4]  }
 0x1b7   :  { %386 = dma.done.wait [#allocation4], 96  }
 0x1b8   :  { %387 = vsyncadd [#allocation4], 4294967200 }
 0x1b9   :  { %276 = vsyncpa [#allocation3], 1 }
 0x1ba   :  { %277 = vsyncpa [#allocation6], 1 }
 0x1bb   :  { %278 = vsyncpa [#allocation4], 1 }

// kernel: tpu_custom_call.1
= control target key start
LH: loop header
LB: loop body
LE: loop exit
PB: predicated region body
PF: predicated region fallthrough
CT: control target
= control target key end

     0   :  { %9 = vsyncpa [#allocation3], 0  ;;  %s472_s0 = inlined_call_operand.hbm [shape: bf16[2,32,64], index: 0, kind: input, shape index: {}]   ;;  %s473_s1 = inlined_call_operand.hbm [shape: f32[32,256], index: 1, kind: input, shape index: {}]   ;;  %s474_s2 = inlined_call_operand.vmem [shape: f32[1,256], index: 2, kind: input, shape index: {}]   ;;  %s475_s3 = inlined_call_operand.vmem [shape: f32[2,128], index: 3, kind: input, shape index: {}]   ;;  %s476_s4 = inlined_call_operand.hbm [shape: f32[2,384], index: 4, kind: output, shape index: {}]  }
   0x1   :  { %10 = vsyncpa [#allocation6], 0 }
   0x2   :  { %11 = vsyncpa [#allocation4], 0  ;;  %s388_s15 = smov [#allocation2]   ;;  %s316_s19 = scalar_lea.hbm %s472_s0, 512 }
   0x3   :  { %s17_s16 = sshll.u32 %s388_s15, 4  ;;  %p317_p0 = scmp.ne.s32.totalorder %s472_s0, %s316_s19  ;;  %s18_s16 = int_to_ptr.vmem [resolvable:$true] %s17_s16 }
   0x4   :  { %p320_p1 = scmp.lt.u32.totalorder %s316_s19, %s472_s0 }
   0x6   :  { %p322_p2 = pnand %p320_p1, %p317_p0 }
   0x8   :  { %325 = shalt.err (!%p322_p2)
}
   0x9   :  { %s326_s24 = scalar_lea.vmem %s18_s16, 512  ;;  %p331_p4 = scmp.lt.s32.totalorder %s18_s16, %s18_s16 }
   0xa   :  { %p327_p3 = scmp.ne.s32.totalorder %s18_s16, %s326_s24  ;;  %p332_p5 = scmp.lt.s32.totalorder %s326_s24, %s326_s24 }
   0xc   :  { %p333_p6 = por %p332_p5, %p331_p4 }
   0xe   :  { %p334_p7 = pnand %p333_p6, %p327_p3 }
  0x10   :  { %337 = shalt.err (!%p334_p7)
}
  0x11   :  { %s389_s25 = smov 64   ;;  %s390_s26 = smov 4  }
  0x12   :  { %23 = dma.hbm_to_vmem [thread:$0]  %s472_s0, 512, %s18_s16, [#allocation3], %s389_s25, %s389_s25, %s390_s26  }
  0x13   :  { %s391_s29 = smov [#allocation5]   ;;  %s338_s7 = scalar_lea.hbm %s473_s1, 1024 }
  0x14   :  { %s29_s30 = sshll.u32 %s391_s29, 4  ;;  %p339_p8 = scmp.ne.s32.totalorder %s473_s1, %s338_s7  ;;  %s30_s30 = int_to_ptr.vmem [resolvable:$true] %s29_s30 }
  0x15   :  { %p342_p9 = scmp.lt.u32.totalorder %s338_s7, %s473_s1 }
  0x17   :  { %p344_p10 = pnand %p342_p9, %p339_p8 }
  0x19   :  { %347 = shalt.err (!%p344_p10)
}
  0x1a   :  { %s348_s12 = scalar_lea.vmem %s30_s30, 1024  ;;  %p353_p12 = scmp.lt.s32.totalorder %s30_s30, %s30_s30 }
  0x1b   :  { %p349_p11 = scmp.ne.s32.totalorder %s30_s30, %s348_s12  ;;  %p354_p13 = scmp.lt.s32.totalorder %s348_s12, %s348_s12 }
  0x1d   :  { %p355_p0 = por %p354_p13, %p353_p12 }
  0x1f   :  { %p356_p1 = pnand %p355_p0, %p349_p11 }
  0x21   :  { %359 = shalt.err (!%p356_p1)
}
  0x22   :  { %s392_s0 = smov 256   ;;  %s393_s13 = smov 16  }
  0x23   :  { %35 = dma.hbm_to_vmem [thread:$0]  %s473_s1, 1024, %s30_s30, [#allocation6], %s392_s0, %s392_s0, %s393_s13  }
  0x24   :  { %382 = dma.done.wait [#allocation3], 512  }
  0x25   :  { %383 = vsyncadd [#allocation3], 4294966784 }
  0x26   :  { %384 = dma.done.wait [#allocation6], 1024  }
  0x27   :  { %385 = vsyncadd [#allocation6], 4294966272  ;;  %v297_v0 = vld [vmem:[#allocation2 + $0x10] sm:$0xff]   ;;  %vm62_vm0 = vcmask 523264   ;;  %v281_v1 = vld [vmem:[#allocation2] sm:$0xff]   ;;  %v394_v32 = vmov 0.0   ;;  %v97_v33 = vlaneseq }
  0x28   :  { %v290_v2 = vunpack.c.l.bf16 %v297_v0  ;;  %v282_v3 = vunpack.c.l.bf16 %v281_v1  ;;  %v291_v4 = vunpack.c.h.bf16 %v297_v0  ;;  %v283_v5 = vunpack.c.h.bf16 %v281_v1  ;;  %v298_v6 = vld [vmem:[#allocation2 + $0x18] sm:$0xff]   ;;  %v296_v7 = vld [vmem:[#allocation2 + $0x8] sm:$0xff]   ;;  %v87_v23 = vld [vmem:[#allocation5] sm:$0xff]  ;;  %230 = vmatprep.mubr.f32.mxu0 %v394_v32 }
  0x29   :  { %v294_v12 = vunpack.c.l.bf16 %v298_v6  ;;  %v286_v13 = vunpack.c.l.bf16 %v296_v7  ;;  %v295_v16 = vunpack.c.h.bf16 %v298_v6  ;;  %v287_v17 = vunpack.c.h.bf16 %v296_v7  ;;  %v88_v20 = vld [vmem:[#allocation5 + $0x8] sm:$0xff]  ;;  %v90_v21 = vld [vmem:[#allocation5 + $0x18] sm:$0xff]  ;;  %v89_v24 = vld [vmem:[#allocation5 + $0x10] sm:$0xff] }
  0x2a   :  { %v75_v8 = vsel %vm62_vm0, %v290_v2, 0.0  ;;  %v63_v9 = vsel %vm62_vm0, %v282_v3, 0.0  ;;  %v78_v10 = vsel %vm62_vm0, %v291_v4, 0.0  ;;  %v66_v11 = vsel %vm62_vm0, %v283_v5, 0.0  ;;  %v92_v26 = vld [vmem:[#allocation5 + $0x28] sm:$0xff]  ;;  %v94_v27 = vld [vmem:[#allocation5 + $0x38] sm:$0xff] }
  0x2b   :  { %76 = vadd.xlane.f32.xlu1 %v75_v8  ;;  %64 = vadd.xlane.f32.xlu0 %v63_v9  ;;  %v81_v14 = vsel %vm62_vm0, %v294_v12, 0.0  ;;  %v69_v15 = vsel %vm62_vm0, %v286_v13, 0.0  ;;  %v84_v18 = vsel %vm62_vm0, %v295_v16, 0.0  ;;  %v72_v19 = vsel %vm62_vm0, %v287_v17, 0.0  ;;  %v91_v29 = vld [vmem:[#allocation5 + $0x20] sm:$0xff]  ;;  %v93_v30 = vld [vmem:[#allocation5 + $0x30] sm:$0xff] }
  0x2c   :  { %v299_v22 = vpack.c.bf16 %v90_v21, %v88_v20  ;;  %v301_v25 = vpack.c.bf16 %v89_v24, %v87_v23  ;;  %v303_v28 = vpack.c.bf16 %v94_v27, %v92_v26  ;;  %v305_v31 = vpack.c.bf16 %v93_v30, %v91_v29  ;;  %v95_v3 = vld [vmem:[%s474_s2] sm:$0x3]  ;;  %s396_s2 = smov [#allocation7]  }
  0x2d   :  { %v116_v34 = vand.u32 127, %v97_v33  ;;  %v98_v39 = vshrl.u32 %v97_v33, 7  ;;  %vm126_vm1 = vcmask 130112   ;;  %vm133_vm2 = vcmask 195712   ;;  %v237_v9 = vld [vmem:[%s475_s3] sm:$0x3] }
  0x2e   :  { %300 = vmatprep.subr.bf16.mxu0 %v299_v22  ;;  %vm140_vm3 = vcmask 261312   ;;  %vm161_vm4 = vcmask 1041409   ;;  %vm163_vm5 = vcmask 261120   ;;  %s269_s19 = sshll.u32 %s396_s2, 4  ;;  %s270_s19 = int_to_ptr.vmem [resolvable:$true] %s269_s19 }
  0x2f   :  { %79 = vadd.xlane.f32.xlu1 %v78_v10  ;;  %67 = vadd.xlane.f32.xlu0 %v66_v11  ;;  %v121_v37 = vadd.s32 4294967288, %v116_v34  ;;  %v128_v38 = vadd.s32 4294967280, %v116_v34  ;;  %v135_v43 = vadd.s32 4294967272, %v116_v34  ;;  %v119_v45 = vsub.s32 %v116_v34, %v98_v39  ;;  %s360_s20 = scalar_lea.vmem %s270_s19, 96  ;;  %p365_p3 = scmp.lt.s32.totalorder %s270_s19, %s270_s19 }
  0x30   :  { %302 = vmatpush1.bf16.msra.mxu0 %v301_v25  ;;  %v103_v2 = vsub.s32 1, %v98_v39  ;;  %v99_v4 = vsub.s32 0, %v98_v39  ;;  %v395_v11 = vmov 1983009808   ;;  %p361_p2 = scmp.ne.s32.totalorder %s270_s19, %s360_s20  ;;  %p366_p4 = scmp.lt.s32.totalorder %s360_s20, %s360_s20 }
  0x31   :  { %304 = vmatprep.subr.bf16.mxu0 %v303_v28  ;;  %v124_v42 = vsub.s32 %v121_v37, %v98_v39  ;;  %v131_v44 = vsub.s32 %v128_v38, %v98_v39  ;;  %v138_v50 = vsub.s32 %v135_v43, %v98_v39  ;;  %v247_v12 = vunpack.c.l.s4 %v395_v11 }
  0x32   :  { %v104_v5 = vrot.slane %v95_v3, %v103_v2  ;;  %v100_v6 = vrot.slane %v95_v3, %v99_v4  ;;  %p367_p5 = por %p366_p4, %p365_p3 }
  0x33   :  { %82 = vadd.xlane.f32.xlu1 %v81_v14  ;;  %70 = vadd.xlane.f32.xlu0 %v69_v15  ;;  %v248_v16 = vunpack.c.0.s8 %v247_v12 }
  0x34   :  { %306 = vmatpush1.bf16.msra.mxu0 %v305_v31  ;;  %p368_p6 = pnand %p367_p5, %p361_p2 }
  0x37   :  { %85 = vadd.xlane.f32.xlu1 %v84_v18  ;;  %73 = vadd.xlane.f32.xlu0 %v72_v19  ;;  %v251_v19 = vsub.s32 %v248_v16, %v98_v39 }
  0xb8   :  { %v77_v35 = vpop.xlane.xlu1 %76  ;;  %v65_v36 = vpop.xlane.xlu0 %64 }
  0xb9   :  { %v145_v53 = vrot.slane %v77_v35, %v119_v45  ;;  %v120_v54 = vrot.slane %v65_v36, %v119_v45 }
  0xbc   :  { %v80_v40 = vpop.xlane.xlu1 %79  ;;  %v68_v41 = vpop.xlane.xlu0 %67 }
  0xbd   :  { %v149_v48 = vrot.slane %v80_v40, %v124_v42  ;;  %v125_v49 = vrot.slane %v68_v41, %v124_v42 }
  0xbf   :  { %v150_v57 = vsel %vm126_vm1, %v149_v48, %v145_v53  ;;  %v127_v58 = vsel %vm126_vm1, %v125_v49, %v120_v54 }
  0xc0   :  { %v83_v46 = vpop.xlane.xlu1 %82  ;;  %v71_v47 = vpop.xlane.xlu0 %70 }
  0xc1   :  { %v154_v51 = vrot.slane %v83_v46, %v131_v44  ;;  %v132_v52 = vrot.slane %v71_v47, %v131_v44 }
  0xc3   :  { %v155_v61 = vsel %vm133_vm2, %v154_v51, %v150_v57  ;;  %v134_v62 = vsel %vm133_vm2, %v132_v52, %v127_v58 }
  0xc4   :  { %v86_v55 = vpop.xlane.xlu1 %85  ;;  %v74_v56 = vpop.xlane.xlu0 %73 }
  0xc5   :  { %v159_v59 = vrot.slane %v86_v55, %v138_v50  ;;  %v139_v60 = vrot.slane %v74_v56, %v138_v50 }
  0xc7   :  { %v160_v63 = vsel %vm140_vm3, %v159_v59, %v155_v61  ;;  %v141_v0 = vsel %vm140_vm3, %v139_v60, %v134_v62 }
  0xc8   :  { %v162_v1 = vsel %vm161_vm4, %v160_v63, %v141_v0 }
  0xc9   :  { %279 = vmatmul.mubr.msk.f32.vlgmr.msra.gmra.mrb[0].mxu0 %vm163_vm5, %v162_v1 }
 0x19c   :  { %v232_v7 = vpop.f32.mrb[0].mxu0 }
 0x19d   :  { %v234_v8 = vpop.f32.mrb[1].mxu0  ;;  %v233_v13 = vadd.f32 %v232_v7, %v100_v6 }
 0x19e   :  { %v235_v10 = vadd.f32 %v234_v8, %v104_v5 }
 0x1a0   :  { %v238_v14 = vmul.f32 %v237_v9, %v235_v10  ;;  %v259_v21 = vrot.slane %v235_v10, %v251_v19 }
 0x1a2   :  { %v239_v15 = vadd.f32 %v238_v14, %v233_v13 }
 0x1a4   :  { %v240_v17 = vmul.f32 %v239_v15, %v235_v10 }
 0x1a6   :  { %v241_v18 = vadd.f32 %v240_v17, %v233_v13 }
 0x1a8   :  { %v245_v20 = vcombine.low %v241_v18, %v233_v13 }
 0x1aa   :  { %v252_v22 = vrot.slane %v245_v20, %v251_v19 }
 0x1ac   :  { %v260_v23 = vcombine.low %v252_v22, %v259_v21 }
 0x1ae   :  { %262 = vst [vmem:[#allocation7] sm:$0x3f] %v260_v23 }
 0x1af   :  { %371 = shalt.err (!%p368_p6)
}
 0x1b0   :  { %s372_s22 = scalar_lea.hbm %s476_s4, 96 }
 0x1b1   :  { %p373_p7 = scmp.ne.s32.totalorder %s476_s4, %s372_s22  ;;  %p376_p8 = scmp.lt.u32.totalorder %s372_s22, %s476_s4 }
 0x1b3   :  { %p378_p9 = pnand %p376_p8, %p373_p7 }
 0x1b5   :  { %381 = shalt.err (!%p378_p9)
}
 0x1b6   :  { %272 = dma.vmem_to_hbm [thread:$0]  %s270_s19, 96, %s476_s4, [#allocation4]  }
 0x1b7   :  { %386 = dma.done.wait [#allocation4], 96  }
 0x1b8   :  { %387 = vsyncadd [#allocation4], 4294967200 }
 0x1b9   :  { %276 = vsyncpa [#allocation3], 1 }
 0x1ba   :  { %277 = vsyncpa [#allocation6], 1 }
 0x1bb   :  { %278 = vsyncpa [#allocation4], 1 }

</bundles_post_ra>
